<compile_context>
chip_gen: v7x
topology: tpu7x:2x2x1
jax: 0.10.0
libtpu: 0.0.40
codegen_flags: <defaults>
</compile_context>

<pallas_src>
import jax
import jax.numpy as jnp
from jax.experimental import pallas as pl
from jax.experimental.pallas import tpu as pltpu


def _round_up(n, m):
    return ((n + m - 1) // m) * m


def pack_params(params, state_dim, action_dim):
    """Pack (w1,b1,w2,b2,w3,b3) into two resident, transposed f32 slabs.

    Returns:
      w1t_aug: (H_pad, IN_PAD)  = w1^T with the layer-1 bias folded in as an
               extra input column (matched by the "ones" row of the input).
      slab:    (2*H_pad + 2*OUT_PAD, H_pad) containing w2^T, b2 (as a column),
               w3^T (row-padded to OUT_PAD) and b3 (as a column).
    All padding lanes/rows are exactly zero so padded hidden/output rows stay
    zero end-to-end.
    """
    w1, b1, w2, b2, w3, b3 = [jnp.asarray(p, jnp.float32) for p in params]
    in_dim = state_dim + action_dim
    hidden = w1.shape[1]
    out_dim = w3.shape[1]
    assert w1.shape[0] == in_dim and w2.shape == (hidden, hidden)

    h_pad = _round_up(hidden, 8)
    out_pad = _round_up(out_dim, 8)
    in_pad = _round_up(in_dim + 1, 8)          # +1 = bias ("ones") column

    w1t_aug = jnp.zeros((h_pad, in_pad), jnp.float32)
    w1t_aug = w1t_aug.at[:hidden, :in_dim].set(w1.T)
    w1t_aug = w1t_aug.at[:hidden, in_dim].set(b1.reshape(-1))

    rows = 2 * h_pad + 2 * out_pad
    slab = jnp.zeros((rows, h_pad), jnp.float32)
    slab = slab.at[:hidden, :hidden].set(w2.T)                      # w2^T
    slab = slab.at[h_pad:h_pad + hidden, 0].set(b2.reshape(-1))     # b2 column
    slab = slab.at[2 * h_pad:2 * h_pad + out_dim, :hidden].set(w3.T)  # w3^T
    slab = slab.at[2 * h_pad + out_pad:2 * h_pad + out_pad + out_dim, 0].set(
        b3.reshape(-1))                                             # b3 column
    return w1t_aug, slab


def _make_kernel(h_pad, out_pad, b_true, tb, n_blocks, has_pad):
    o_w2 = 0
    o_b2 = h_pad
    o_w3 = 2 * h_pad
    o_b3 = 2 * h_pad + out_pad

    def kernel(xT_ref, tT_ref, w1t_ref, slab_ref, out_ref, acc_ref):
        c = pl.program_id(0)          # parallel (per-TensorCore) batch split
        i = pl.program_id(1)          # sequential accumulation axis

        @pl.when(i == 0)
        def _init():
            acc_ref[...] = jnp.zeros_like(acc_ref)

        start = (c * n_blocks + i) * tb      # first batch column of this block

        # Skip blocks that are entirely zero padding.
        @pl.when(start < b_true)
        def _compute():
            # Static slices of the resident transposed weight slabs.
            w1t = w1t_ref[...]                          # (H_pad, IN_PAD) incl. bias col
            w2t = slab_ref[o_w2:o_w2 + h_pad, :]        # (H_pad, H_pad)
            b2c = slab_ref[o_b2:o_b2 + h_pad, :][:, :1]   # (H_pad, 1)
            w3t = slab_ref[o_w3:o_w3 + out_pad, :]      # (OUT_PAD, H_pad)
            b3c = slab_ref[o_b3:o_b3 + out_pad, :][:, :1]  # (OUT_PAD, 1)

            xT = xT_ref[...]                            # (IN_PAD, TB), row IN = ones

            # Layer 1: single merged matmul; bias comes in via the ones row.
            h1 = jnp.maximum(
                jnp.dot(w1t, xT, preferred_element_type=jnp.float32), 0.0)
            # Layer 2.
            h2 = jnp.maximum(
                jnp.dot(w2t, h1, preferred_element_type=jnp.float32) + b2c, 0.0)
            # Output layer: predicted next state (rows >= state_dim stay 0).
            pred = jnp.dot(w3t, h2, preferred_element_type=jnp.float32) + b3c

            diff = pred - tT_ref[...]                   # (OUT_PAD, TB), lane dense
            sq = diff * diff

            if has_pad:
                # Mask only on blocks that straddle the real batch end.
                @pl.when(start + tb <= b_true)
                def _full():
                    acc_ref[...] += sq

                @pl.when(start + tb > b_true)
                def _ragged():
                    col = jax.lax.broadcasted_iota(jnp.int32, sq.shape, 1) + start
                    acc_ref[...] += jnp.where(col < b_true, sq, 0.0)
            else:
                acc_ref[...] += sq

        @pl.when(i == n_blocks - 1)
        def _finalize():
            # Single cross-lane reduce + store, once per core.
            out_ref[...] = jnp.zeros_like(out_ref) + jnp.sum(acc_ref[...])

    return kernel


def single_step_loss(state, action, target_state, packed_params, *,
                     block_b=2048, n_cores=2):
    """Equivalent of SingleStepLoss(nn.MSELoss())(model, state, action, target_state).

    `packed_params` = pack_params(params, state_dim, action_dim), built once.
    """
    w1t, slab = packed_params
    state = jnp.asarray(state, jnp.float32)
    action = jnp.asarray(action, jnp.float32)
    tgt = jnp.asarray(target_state, jnp.float32)

    b, s_dim = state.shape
    a_dim = action.shape[-1]
    in_dim = s_dim + a_dim
    assert tgt.shape == (b, s_dim)

    h_pad, in_pad = w1t.shape
    out_pad = (slab.shape[0] - 2 * h_pad) // 2
    assert slab.shape == (2 * h_pad + 2 * out_pad, h_pad)
    assert in_pad >= in_dim + 1 and out_pad >= s_dim

    # Batch tile (lane axis): multiple of 128 (and 256-friendly by default for
    # the v6e/v7x 256-wide MXU).  VMEM per tile is ~5*32*TB bytes, tiny.
    per_core = -(-b // n_cores)
    tb = max(128, _round_up(min(block_b, _round_up(per_core, 128)), 128))
    n_blocks = -(-per_core // tb)                # blocks per core
    b_pad = n_cores * n_blocks * tb

    # Feature-major (transposed) inputs, bias "ones" row folded into x.
    x_aug = jnp.concatenate(
        [state, action, jnp.ones((b, 1), jnp.float32)], axis=1)   # (B, in_dim+1)
    x_aug = jnp.pad(x_aug, ((0, b_pad - b), (0, in_pad - (in_dim + 1))))
    xT = x_aug.T                                                   # (IN_PAD, B_pad)
    tT = jnp.pad(tgt, ((0, b_pad - b), (0, out_pad - s_dim))).T    # (OUT_PAD, B_pad)

    kernel = _make_kernel(h_pad, out_pad, b, tb, n_blocks, b_pad != b)

    grid_spec = pltpu.PrefetchScalarGridSpec(
        num_scalar_prefetch=0,
        grid=(n_cores, n_blocks),
        in_specs=[
            pl.BlockSpec((in_pad, tb), lambda c, i: (0, c * n_blocks + i)),
            pl.BlockSpec((out_pad, tb), lambda c, i: (0, c * n_blocks + i)),
            # Resident constant weights: single-buffered, fetched once.
            pl.BlockSpec((h_pad, in_pad), lambda c, i: (0, 0),
                         pipeline_mode=pl.Buffered(1)),
            pl.BlockSpec(slab.shape, lambda c, i: (0, 0),
                         pipeline_mode=pl.Buffered(1)),
        ],
        # One (8,128) output tile per core; only [0,0] of each is meaningful.
        out_specs=pl.BlockSpec((8, 128), lambda c, i: (c, 0)),
        scratch_shapes=[pltpu.VMEM((out_pad, tb), jnp.float32)],   # per-lane SSE acc
    )

    flops = 2 * b_pad * (in_pad * h_pad + h_pad * h_pad + h_pad * out_pad)
    bytes_accessed = 4 * (xT.size + tT.size + w1t.size + slab.size
                          + n_cores * 8 * 128)

    out = pl.pallas_call(
        kernel,
        out_shape=jax.ShapeDtypeStruct((n_cores * 8, 128), jnp.float32),
        grid_spec=grid_spec,
        compiler_params=pltpu.CompilerParams(
            dimension_semantics=("parallel", "arbitrary"),
            vmem_limit_bytes=32 * 1024 * 1024),
        cost_estimate=pl.CostEstimate(
            flops=flops, transcendentals=0, bytes_accessed=bytes_accessed),
    )(xT, tT, w1t, slab)

    sse = jnp.sum(out.reshape(n_cores, 8, 128)[:, 0, 0])   # sum per-core partials
    return sse / (b * s_dim)                                # MSE mean over B*state_dim


def init_params(key, state_dim, action_dim, hidden_dim):
    """Deterministic synthetic MLP parameters (weights stored (in, out))."""
    k1, k2, k3 = jax.random.split(key, 3)
    in_dim = state_dim + action_dim
    w1 = jax.random.normal(k1, (in_dim, hidden_dim), jnp.float32) * 0.1
    b1 = jnp.zeros((1, hidden_dim), jnp.float32)
    w2 = jax.random.normal(k2, (hidden_dim, hidden_dim), jnp.float32) * 0.1
    b2 = jnp.zeros((1, hidden_dim), jnp.float32)
    w3 = jax.random.normal(k3, (hidden_dim, state_dim), jnp.float32) * 0.1
    b3 = jnp.zeros((1, state_dim), jnp.float32)
    return (w1, b1, w2, b2, w3, b3)


def _reference_loss(state, action, target_state, params):
    """Pure-JAX reference for correctness checking."""
    w1, b1, w2, b2, w3, b3 = params
    x = jnp.concatenate([state, action], axis=-1)
    h1 = jnp.maximum(x @ w1 + b1, 0.0)
    h2 = jnp.maximum(h1 @ w2 + b2, 0.0)
    pred = h2 @ w3 + b3
    return jnp.mean((pred - target_state) ** 2)


if __name__ == "__main__":
    # Small shapes consistent with the dynamics-model use case.
    B, STATE_DIM, ACTION_DIM, HIDDEN = 8, 3, 3, 32

    key = jax.random.PRNGKey(0)
    k_s, k_a, k_t, k_p = jax.random.split(key, 4)

    state = jax.random.normal(k_s, (B, STATE_DIM), jnp.float32)
    action = jax.random.normal(k_a, (B, ACTION_DIM), jnp.float32)
    target_state = jax.random.normal(k_t, (B, STATE_DIM), jnp.float32)
    params = init_params(k_p, STATE_DIM, ACTION_DIM, HIDDEN)

    # Pack transposed parameters once (resident, single-buffered in the kernel).
    packed = pack_params(params, STATE_DIM, ACTION_DIM)

    loss = single_step_loss(state, action, target_state, packed)
    loss = jax.block_until_ready(loss)

    ref = _reference_loss(state, action, target_state, params)
    assert jnp.allclose(loss, ref, rtol=1e-4, atol=1e-5), (loss, ref)

    print("KERNEL_OK")
</pallas_src>

<mosaic_0001>
module attributes {stable_mosaic.version = 11 : i64} {
  func.func @kernel(%arg0: i32, %arg1: i32, %arg2: memref<8x128xf32, #tpu.memory_space<vmem>>, %arg3: memref<8x128xf32, #tpu.memory_space<vmem>>, %arg4: memref<32x8xf32, #tpu.memory_space<vmem>>, %arg5: memref<80x32xf32, #tpu.memory_space<vmem>>, %arg6: memref<8x128xf32, #tpu.memory_space<vmem>>, %arg7: memref<8x128xf32, #tpu.memory_space<vmem>>) attributes {dimension_semantics = [#tpu.dimension_semantics<parallel>, #tpu.dimension_semantics<arbitrary>], iteration_bounds = array<i64: 2, 1>, scalar_prefetch = 0 : i64, scratch_operands = 1 : i64, tpu.core_type = #tpu.core_type<tc>, window_params = [{transform_indices = @transform_0, window_bounds = array<i64: 8, 128>}, {transform_indices = @transform_1, window_bounds = array<i64: 8, 128>}, {pipeline_mode = #tpu.pipeline_mode<synchronous>, transform_indices = @transform_2, window_bounds = array<i64: 32, 8>}, {pipeline_mode = #tpu.pipeline_mode<synchronous>, transform_indices = @transform_3, window_bounds = array<i64: 80, 32>}, {transform_indices = @transform_4, window_bounds = array<i64: 8, 128>}]} {
    %c0_i32 = arith.constant 0 : i32
    %0 = arith.cmpi eq, %arg1, %c0_i32 : i32
    %1 = arith.extui %0 : i1 to i32
    %c0_i32_0 = arith.constant 0 : i32
    %2 = arith.cmpi ne, %1, %c0_i32_0 : i32
    scf.if %2 {
      %cst = arith.constant 0.000000e+00 : f32
      %12 = vector.broadcast %cst : f32 to vector<8x128xf32>
      %c0 = arith.constant 0 : index
      %c0_4 = arith.constant 0 : index
      %13 = vector.load %arg7[%c0, %c0_4] : memref<8x128xf32, #tpu.memory_space<vmem>>, vector<8x128xf32>
      tpu.vector_store %arg7[%c0, %c0_4], %12 {strides = array<i32>} : memref<8x128xf32, #tpu.memory_space<vmem>>, vector<8x128xf32>,
    } else {
    }
    %c1_i32 = arith.constant 1 : i32
    %3 = arith.muli %arg0, %c1_i32 : i32
    %4 = arith.addi %3, %arg1 : i32
    %c128_i32 = arith.constant 128 : i32
    %5 = arith.muli %4, %c128_i32 : i32
    %c8_i32 = arith.constant 8 : i32
    %6 = arith.cmpi slt, %5, %c8_i32 : i32
    %7 = arith.extui %6 : i1 to i32
    %c0_i32_1 = arith.constant 0 : i32
    %8 = arith.cmpi ne, %7, %c0_i32_1 : i32
    scf.if %8 {
      %c0 = arith.constant 0 : index
      %c0_4 = arith.constant 0 : index
      %12 = vector.load %arg4[%c0, %c0_4] : memref<32x8xf32, #tpu.memory_space<vmem>>, vector<32x8xf32>
      %c0_5 = arith.constant 0 : index
      %c0_6 = arith.constant 0 : index
      %13 = vector.load %arg5[%c0_5, %c0_6] : memref<80x32xf32, #tpu.memory_space<vmem>>, vector<32x32xf32>
      %c32 = arith.constant 32 : index
      %c0_7 = arith.constant 0 : index
      %14 = vector.load %arg5[%c32, %c0_7] : memref<80x32xf32, #tpu.memory_space<vmem>>, vector<32x32xf32>
      %15 = vector.extract_strided_slice %14 {offsets = [0, 0], sizes = [32, 1], strides = [1, 1]} : vector<32x32xf32> to vector<32x1xf32>
      %c64 = arith.constant 64 : index
      %c0_8 = arith.constant 0 : index
      %16 = vector.load %arg5[%c64, %c0_8] : memref<80x32xf32, #tpu.memory_space<vmem>>, vector<8x32xf32>
      %c72 = arith.constant 72 : index
      %c0_9 = arith.constant 0 : index
      %17 = vector.load %arg5[%c72, %c0_9] : memref<80x32xf32, #tpu.memory_space<vmem>>, vector<8x32xf32>
      %18 = vector.extract_strided_slice %17 {offsets = [0, 0], sizes = [8, 1], strides = [1, 1]} : vector<8x32xf32> to vector<8x1xf32>
      %c0_10 = arith.constant 0 : index
      %c0_11 = arith.constant 0 : index
      %19 = vector.load %arg2[%c0_10, %c0_11] : memref<8x128xf32, #tpu.memory_space<vmem>>, vector<8x128xf32>
      %cst = arith.constant dense<0.000000e+00> : vector<32x128xf32>
      %20 = tpu.matmul %12, %19, %cst {dimension_numbers = #tpu.dot_dimension_numbers<[1], [0], [0], [1], [0, 0, 1, 1], [], []>} : vector<32x8xf32>, vector<8x128xf32>, vector<32x128xf32> -> vector<32x128xf32>
      %cst_12 = arith.constant 0.000000e+00 : f32
      %21 = vector.broadcast %cst_12 : f32 to vector<32x128xf32>
      %22 = arith.maximumf %20, %21 : vector<32x128xf32>
      %cst_13 = arith.constant dense<0.000000e+00> : vector<32x128xf32>
      %23 = tpu.matmul %13, %22, %cst_13 {dimension_numbers = #tpu.dot_dimension_numbers<[1], [0], [0], [1], [0, 0, 1, 1], [], []>} : vector<32x32xf32>, vector<32x128xf32>, vector<32x128xf32> -> vector<32x128xf32>
      %24 = vector.broadcast %15 : vector<32x1xf32> to vector<32x128xf32>
      %25 = arith.addf %23, %24 : vector<32x128xf32>
      %cst_14 = arith.constant 0.000000e+00 : f32
      %26 = vector.broadcast %cst_14 : f32 to vector<32x128xf32>
      %27 = arith.maximumf %25, %26 : vector<32x128xf32>
      %cst_15 = arith.constant dense<0.000000e+00> : vector<8x128xf32>
      %28 = tpu.matmul %16, %27, %cst_15 {dimension_numbers = #tpu.dot_dimension_numbers<[1], [0], [0], [1], [0, 0, 1, 1], [], []>} : vector<8x32xf32>, vector<32x128xf32>, vector<8x128xf32> -> vector<8x128xf32>
      %29 = vector.broadcast %18 : vector<8x1xf32> to vector<8x128xf32>
      %30 = arith.addf %28, %29 : vector<8x128xf32>
      %c0_16 = arith.constant 0 : index
      %c0_17 = arith.constant 0 : index
      %31 = vector.load %arg3[%c0_16, %c0_17] : memref<8x128xf32, #tpu.memory_space<vmem>>, vector<8x128xf32>
      %32 = arith.subf %30, %31 : vector<8x128xf32>
      %33 = arith.mulf %32, %32 : vector<8x128xf32>
      %c128_i32_18 = arith.constant 128 : i32
      %34 = arith.addi %5, %c128_i32_18 : i32
      %c8_i32_19 = arith.constant 8 : i32
      %35 = arith.cmpi sle, %34, %c8_i32_19 : i32
      %36 = arith.extui %35 : i1 to i32
      %c0_i32_20 = arith.constant 0 : i32
      %37 = arith.cmpi ne, %36, %c0_i32_20 : i32
      scf.if %37 {
        %c0_24 = arith.constant 0 : index
        %c0_25 = arith.constant 0 : index
        %42 = vector.load %arg7[%c0_24, %c0_25] : memref<8x128xf32, #tpu.memory_space<vmem>>, vector<8x128xf32>
        %43 = arith.addf %42, %33 : vector<8x128xf32>
        %c0_26 = arith.constant 0 : index
        %c0_27 = arith.constant 0 : index
        %44 = vector.load %arg7[%c0_26, %c0_27] : memref<8x128xf32, #tpu.memory_space<vmem>>, vector<8x128xf32>
        tpu.vector_store %arg7[%c0_26, %c0_27], %43 {strides = array<i32>} : memref<8x128xf32, #tpu.memory_space<vmem>>, vector<8x128xf32>,
      } else {
      }
      %c128_i32_21 = arith.constant 128 : i32
      %38 = arith.addi %5, %c128_i32_21 : i32
      %c8_i32_22 = arith.constant 8 : i32
      %39 = arith.cmpi sgt, %38, %c8_i32_22 : i32
      %40 = arith.extui %39 : i1 to i32
      %c0_i32_23 = arith.constant 0 : i32
      %41 = arith.cmpi ne, %40, %c0_i32_23 : i32
      scf.if %41 {
        %42 = tpu.iota {dimensions = array<i32: 1>} : vector<8x128xi32>
        %43 = vector.broadcast %5 : i32 to vector<8x128xi32>
        %44 = arith.addi %42, %43 : vector<8x128xi32>
        %c0_24 = arith.constant 0 : index
        %c0_25 = arith.constant 0 : index
        %45 = vector.load %arg7[%c0_24, %c0_25] : memref<8x128xf32, #tpu.memory_space<vmem>>, vector<8x128xf32>
        %c8_i32_26 = arith.constant 8 : i32
        %46 = vector.broadcast %c8_i32_26 : i32 to vector<8x128xi32>
        %47 = arith.cmpi slt, %44, %46 : vector<8x128xi32>
        %cst_27 = arith.constant 0.000000e+00 : f32
        %48 = vector.broadcast %cst_27 : f32 to vector<8x128xf32>
        %49 = arith.select %47, %33, %48 : vector<8x128xi1>, vector<8x128xf32>
        %50 = arith.addf %45, %49 : vector<8x128xf32>
        %c0_28 = arith.constant 0 : index
        %c0_29 = arith.constant 0 : index
        %51 = vector.load %arg7[%c0_28, %c0_29] : memref<8x128xf32, #tpu.memory_space<vmem>>, vector<8x128xf32>
        tpu.vector_store %arg7[%c0_28, %c0_29], %50 {strides = array<i32>} : memref<8x128xf32, #tpu.memory_space<vmem>>, vector<8x128xf32>,
      } else {
      }
    } else {
    }
    %c0_i32_2 = arith.constant 0 : i32
    %9 = arith.cmpi eq, %arg1, %c0_i32_2 : i32
    %10 = arith.extui %9 : i1 to i32
    %c0_i32_3 = arith.constant 0 : i32
    %11 = arith.cmpi ne, %10, %c0_i32_3 : i32
    scf.if %11 {
      %cst = arith.constant 0.000000e+00 : f32
      %12 = vector.broadcast %cst : f32 to vector<8x128xf32>
      %c0 = arith.constant 0 : index
      %c0_4 = arith.constant 0 : index
      %13 = vector.load %arg7[%c0, %c0_4] : memref<8x128xf32, #tpu.memory_space<vmem>>, vector<8x128xf32>
      %14 = vector.shape_cast %13 : vector<8x128xf32> to vector<1x8x128xf32>
      %cst_5 = arith.constant dense<0.000000e+00> : vector<1xf32>
      %15 = vector.multi_reduction <add>, %14, %cst_5 [1, 2] : vector<1x8x128xf32> to vector<1xf32>
      %16 = vector.shape_cast %15 : vector<1xf32> to vector<1x1x1xf32>
      %17 = vector.extract %16[0, 0, 0] : f32 from vector<1x1x1xf32>
      %18 = vector.broadcast %17 : f32 to vector<8x128xf32>
      %19 = arith.addf %12, %18 : vector<8x128xf32>
      %c0_6 = arith.constant 0 : index
      %c0_7 = arith.constant 0 : index
      %20 = vector.load %arg6[%c0_6, %c0_7] : memref<8x128xf32, #tpu.memory_space<vmem>>, vector<8x128xf32>
      tpu.vector_store %arg6[%c0_6, %c0_7], %19 {strides = array<i32>} : memref<8x128xf32, #tpu.memory_space<vmem>>, vector<8x128xf32>,
    } else {
    }
    return
  }
  func.func @transform_0(%arg0: i32, %arg1: i32) -> (i32, i32) {
    %c1_i32 = arith.constant 1 : i32
    %0 = arith.muli %arg0, %c1_i32 : i32
    %1 = arith.addi %0, %arg1 : i32
    %c0_i32 = arith.constant 0 : i32
    %c0_i32_0 = arith.constant 0 : i32
    return %c0_i32, %1 : i32, i32
  }
  func.func @transform_1(%arg0: i32, %arg1: i32) -> (i32, i32) {
    %c1_i32 = arith.constant 1 : i32
    %0 = arith.muli %arg0, %c1_i32 : i32
    %1 = arith.addi %0, %arg1 : i32
    %c0_i32 = arith.constant 0 : i32
    %c0_i32_0 = arith.constant 0 : i32
    return %c0_i32, %1 : i32, i32
  }
  func.func @transform_2(%arg0: i32, %arg1: i32) -> (i32, i32) {
    %c0_i32 = arith.constant 0 : i32
    %c0_i32_0 = arith.constant 0 : i32
    %c0_i32_1 = arith.constant 0 : i32
    return %c0_i32, %c0_i32_0 : i32, i32
  }
  func.func @transform_3(%arg0: i32, %arg1: i32) -> (i32, i32) {
    %c0_i32 = arith.constant 0 : i32
    %c0_i32_0 = arith.constant 0 : i32
    %c0_i32_1 = arith.constant 0 : i32
    return %c0_i32, %c0_i32_0 : i32, i32
  }
  func.func @transform_4(%arg0: i32, %arg1: i32) -> (i32, i32) {
    %c0_i32 = arith.constant 0 : i32
    %c0_i32_0 = arith.constant 0 : i32
    return %arg0, %c0_i32 : i32, i32
  }
}

</mosaic_0001>

<bundles_post_ra>
// kernel: tpu_custom_call.1
= control target key start
LH: loop header
LB: loop body
LE: loop exit
PB: predicated region body
PF: predicated region fallthrough
CT: control target
= control target key end

     0   :  { %9 = vsyncpa [#allocation4], 0  ;;  %s1139_s0 = inlined_call_operand.vmem [shape: f32[8,256], index: 0, kind: input, shape index: {}]   ;;  %s1140_s1 = inlined_call_operand.vmem [shape: f32[8,256], index: 1, kind: input, shape index: {}]   ;;  %s1141_s2 = inlined_call_operand.vmem [shape: f32[32,8], index: 2, kind: input, shape index: {}]   ;;  %s1142_s3 = inlined_call_operand.vmem [shape: f32[80,32], index: 3, kind: input, shape index: {}]   ;;  %s1143_s4 = inlined_call_operand.hbm [shape: f32[16,128], index: 4, kind: output, shape index: {}]  }
   0x1   :  { %11 = vsyncpa [#allocation4 + $0x1], 0  ;;  %s962_s15 = smov 0   ;;  %s964_s16 = smov 0  }
   0x2   :  { %s966_s17 = smov 0   ;;  %s968_s18 = smov 0  }
   0x3   :  { %s970_s19 = smov 0   ;;  %s972_s20 = smov 0  }
   0x4 LB: > { %s697_s21 = sadd.s32 4294967295, %s929_s20   ;;  %s698_s22 = sadd.s32 4294967294, %s929_s20   ;;  %s929_s20 = sphi %s972_s20, %s17_s20   ;;  %s925_s19 = sphi %s970_s19, %s1150_s19   ;;  %s921_s18 = sphi %s968_s18, %s1149_s18   ;;  %s917_s17 = sphi %s966_s17, %s1148_s17   ;;  %s913_s16 = sphi %s964_s16, %s1147_s16   ;;  %s909_s15 = sphi %s962_s15, %s1146_s15  }
   0x5   : > { %s29_s23 = sadd.s32 1, %s925_s19  ;;  %s134_s24 = sadd.s32 1, %s917_s17 }
   0x6   : > { %p31_p0 = scmp.ge.s32.totalorder %s29_s23, 2  ;;  %p144_p1 = scmp.ne.s32.totalorder %s917_s17, %s913_s16 }
   0x7   : > { %p145_p2 = scmp.eq.s32.totalorder %s697_s21, 1  ;;  %p150_p3 = scmp.ne.s32.totalorder %s913_s16, %s909_s15 }
   0x8   : > { %s1152_s23 = smov (%p31_p0, %s29_s23), 0  ;;  %p151_p5 = scmp.eq.s32.totalorder %s698_s22, 1 }
   0x9   : > { %p1000_p4 = por %p145_p2, %p144_p1  ;;  %s131_s26 = ssub.s32 %s925_s19, %s1152_s23 }
   0xa   : > { %p701_p6 = scmp.ge.s32.totalorder %s929_s20, 1  ;;  %p132_p7 = scmp.eq.s32.totalorder %s131_s26, 0 }
   0xb   : > { %p1007_p8 = por %p151_p5, %p150_p3  ;;  %p193_p9 = scmp.lt.s32.totalorder %s929_s20, 3 }
   0xc   : > { %s1013_s28 = scalar_select %p132_p7, %s917_s17, %s134_s24  }
   0xd   : > { %p194_p10 = pnand %p701_p6, %p193_p9 }
   0xe   : > { %s221_s29 = sand.u32 (!%p194_p10), 1, %s913_s16   ;;  %p225_p11 = scmp.lt.s32.totalorder (!%p194_p10), %s921_s18, 1  ;;  %v931_v0 = vmov (!%p194_p10), 0.0  }
   0xf   : > { %197 = sbr.rel (%p194_p10) target bundleno = 938 (0x3aa), region = 36  ;;  %s1018_s30 = sshll.u32 (!%p194_p10), %s221_s29, 3  ;;  %240 = vst [vmem:[#allocation2] sm:$0xff] (!%p194_p10), %v931_v0 }
  0x10   : > { %s1020_s5 = sshll.u32 (!%p194_p10), %s921_s18, 7  ;;  %s223_s13 = scalar_lea.vmem (!%p194_p10), [#allocation3], %s1018_s30 }
  0x11   : > { %p706_p12 = scmp.ge.s32.totalorder (!%p194_p10), %s1020_s5, 8 }
  0x16   : > { %s1154_s18 = smov (!%p225_p11, %s921_s18), 1  ;;  %246 = sbr.rel (%p706_p12) target bundleno = 712 (0x2c8), region = 44 }
  0x17   : > { %s703_s6 = sshll.u32 %s1154_s18, 3  ;;  %v247_v2 = vld [vmem:[%s1141_s2] sm:$0xff] (!%p706_p12)  ;;  %vm262_vm0 = vcmask (!%p706_p12), 64512   ;;  %v248_v3 = vld [vmem:[%s1141_s2 + $0x8] sm:$0xff] (!%p706_p12)  ;;  %v249_v4 = vld [vmem:[%s1141_s2 + $0x10] sm:$0xff] (!%p706_p12)  ;;  %vm384_vm1 = vcmask (!%p706_p12), 261120  }
  0x18   : > { %s228_s9 = scalar_lea.vmem %s1139_s0, %s703_s6  ;;  %s1028_s12 = scalar_lea.vmem %s1140_s1, %s703_s6  ;;  %742 = vmatprep.mubr.msk.f32.mxu0 (!%p706_p12), %vm262_vm0, %v247_v2  ;;  %v250_v5 = vld [vmem:[%s1141_s2 + $0x18] sm:$0xff] (!%p706_p12)  ;;  %v251_v6 = vld [vmem:[%s1142_s3] sm:$0xff] (!%p706_p12)  ;;  %v257_v8 = vld [vmem:[%s1142_s3 + $0x30] sm:$0xff] (!%p706_p12)  ;;  %v932_v9 = vmov (!%p706_p12), 0   ;;  %v933_v26 = vmov (!%p706_p12), 0.0|0.0   ;;  %vm934_vm2 = vmmov (!%p706_p12), 0  }
  0x19   : > { %v261_v1 = vld [vmem:[%s228_s9] sm:$0xff] (!%p706_p12)  ;;  %756 = vmatprep.mubr.msk.f32.mxu1 (!%p706_p12), %vm384_vm1, %v251_v6  ;;  %849 = vset.pattern.permute.xlu0 (!%p706_p12), %v932_v9  ;;  %v256_v10 = vld [vmem:[%s1142_s3 + $0x28] sm:$0xff] (!%p706_p12)  ;;  %v258_v11 = vld [vmem:[%s1142_s3 + $0x38] sm:$0xff] (!%p706_p12)  ;;  %v935_v27 = vmov (!%p706_p12), 0.0   ;;  %s567_s24 = sadd.s32 (!%p706_p12), 128, %s1020_s5 }
  0x1a   : > { %740 = vmatprep.subr.mxu0 (!%p706_p12), %v261_v1  ;;  %v255_v7 = vld [vmem:[%s1142_s3 + $0x20] sm:$0xff] (!%p706_p12)  ;;  %850 = vset.pattern.permute.xlu1 (!%p706_p12), %v932_v9  ;;  %v260_v12 = vld [vmem:[%s1142_s3 + $0x48] sm:$0xff] (!%p706_p12)  ;;  %v253_v24 = vld [vmem:[%s1142_s3 + $0x10] sm:$0xff] (!%p706_p12)  ;;  %p716_p13 = scmp.gt.s32.totalorder (!%p706_p12), %s567_s24, 8 }
  0x1b   : > { %741 = vmatpush3.msra.mxu0 (!%p706_p12), %v261_v1  ;;  %366 = vperm.xlu0 (!%p706_p12), %849, %v255_v7   ;;  %v252_v23 = vld [vmem:[%s1142_s3 + $0x8] sm:$0xff] (!%p706_p12)  ;;  %v254_v25 = vld [vmem:[%s1142_s3 + $0x18] sm:$0xff] (!%p706_p12)  ;;  %v259_v46 = vld [vmem:[%s1142_s3 + $0x40] sm:$0xff] (!%p706_p12) }
  0x1c   : > { %743 = vmatmul.mubr.msk.f32.vlgmr.msra.gmra.mrb[0].mxu0 (!%p706_p12), %vm262_vm0, %v248_v3  ;;  %376 = vperm.xlu1 (!%p706_p12), %850, %v257_v8   ;;  %v564_v49 = vld [vmem:[%s1028_s12] sm:$0xff] (!%p706_p12) }
  0x1d   : > { %745 = vmatprep.mubr.msk.f32.mxu0 %vm262_vm0, %v249_v4  ;;  %781 = vmatprep.subr.bf16.mxu0 %v933_v26  ;;  %v572_v54 = vld [vmem:[#allocation2] sm:$0xff] (!%p716_p13) }
  0x1f   : > { %371 = vperm.xlu0 %849, %v256_v10  }
  0x20   : > { %746 = vmatmul.mubr.msk.f32.gmra.mrb[2].mxu0 %vm262_vm0, %v250_v5  ;;  %381 = vperm.xlu1 %850, %v258_v11  }
  0x21   : > { %770 = vmatprep.mubr.msk.f32.mxu0 %vm934_vm2, %v935_v27 }
  0x23   : > { %488 = vperm.xlu0 %849, %v260_v12  }
  0x9a   : > { %v367_v28 = vpop.permute.xlu0 %366 }
  0x9b   : > { %v377_v29 = vpop.permute.xlu1 %376 }
  0x9e   : > { %v372_v30 = vpop.permute.xlu0 %371 }
  0x9f   : > { %v382_v36 = vpop.permute.xlu1 %381 }
  0xa2   : > { %v489_v47 = vpop.permute.xlu0 %488 }
  0xef   : > { %v744_v13 = vpop.f32.mrb[0].mxu0 }
  0xf0   : > { %v361_v14 = vmax.f32 %v744_v13, 0.0  ;;  %v341_v15 = vpop.f32.mrb[1].mxu0 }
  0xf1   : > { %v360_v16 = vmax.f32 %v341_v15, 0.0 }
  0xf3   : > { %v747_v17 = vpop.f32.mrb[2].mxu0  ;;  %v773_v18 = vpack.c.bf16 %v361_v14, %v360_v16 }
  0xf4   : > { %v363_v19 = vmax.f32 %v747_v17, 0.0  ;;  %v351_v20 = vpop.f32.mrb[3].mxu0 }
  0xf5   : > { %v362_v21 = vmax.f32 %v351_v20, 0.0  ;;  %774 = vmatprep.subr.bf16.mxu1 %v773_v18 }
  0xf6   : > { %776 = vmatpush3.bf16.msra.mxu1 %v773_v18 }
  0xf7   : > { %v777_v22 = vpack.c.bf16 %v363_v19, %v362_v21 }
  0xf9   : > { %778 = vmatprep.subr.bf16.mxu1 %v777_v22 }
  0xfa   : > { %780 = vmatpush3.bf16.msra.mxu1 %v777_v22 }
  0xfd   : > { %757 = vmatmul.mubr.msk.f32.vlgmr.msra.gmra.mrb[0].mxu1 %vm384_vm1, %v252_v23 }
  0xfe   : > { %759 = vmatprep.mubr.msk.f32.mxu1 %vm384_vm1, %v253_v24 }
 0x101   : > { %760 = vmatmul.mubr.msk.f32.gmra.mrb[2].mxu1 %vm384_vm1, %v254_v25 }
 0x1d0   : > { %v758_v31 = vpop.f32.mrb[0].mxu1 }
 0x1d1   : > { %v469_v32 = vadd.f32 %v758_v31, %v372_v30  ;;  %v463_v33 = vpop.f32.mrb[1].mxu1 }
 0x1d2   : > { %v464_v34 = vadd.f32 %v463_v33, %v367_v28 }
 0x1d3   : > { %v483_v35 = vmax.f32 %v469_v32, 0.0 }
 0x1d4   : > { %v482_v37 = vmax.f32 %v464_v34, 0.0  ;;  %v761_v38 = vpop.f32.mrb[2].mxu1 }
 0x1d5   : > { %v479_v39 = vadd.f32 %v761_v38, %v382_v36  ;;  %v473_v40 = vpop.f32.mrb[3].mxu1 }
 0x1d6   : > { %v782_v41 = vpack.c.bf16 %v483_v35, %v482_v37  ;;  %v474_v42 = vadd.f32 %v473_v40, %v377_v29 }
 0x1d7   : > { %v485_v43 = vmax.f32 %v479_v39, 0.0 }
 0x1d8   : > { %v484_v44 = vmax.f32 %v474_v42, 0.0  ;;  %783 = vmatpush3.bf16.msra.mxu0 %v782_v41 }
 0x1d9   : > { %784 = vmatprep.subr.bf16.mxu0 %v933_v26 }
 0x1da   : > { %v785_v45 = vpack.c.bf16 %v485_v43, %v484_v44 }
 0x1dc   : > { %786 = vmatpush3.bf16.msra.mxu0 %v785_v45 }
 0x1df   : > { %771 = vmatmul.mubr.msk.f32.vlgmr.msra.gmra.mrb[4].mxu0 %vm384_vm1, %v259_v46 }
 0x2b1   : > { %571 = sbr.rel (%p716_p13) target bundleno = 700 (0x2bc), region = 48 }
 0x2b2   : > { %v560_v48 = vpop.f32.mrb[4].mxu0 }
 0x2b3   : > { %v561_v50 = vadd.f32 %v560_v48, %v489_v47  ;;  %v772_v51 = vpop.f32.mrb[5].mxu0 }
 0x2b5   : > { %v565_v52 = vsub.f32 %v561_v50, %v564_v49 }
 0x2b7   : > { %v566_v53 = vmul.f32 %v565_v52, %v565_v52 }
 0x2b9   : > { %v573_v55 = vadd.f32 %v572_v54, %v566_v53 }
 0x2bb   : > { %574 = vst [vmem:[#allocation2] sm:$0xff] %v573_v55 }
 0x2bc PF: > { %p717_p0 = scmp.le.s32.totalorder %s567_s24, 8 }
 0x2bd   : > { %v579_v56 = vlaneseq (!%p717_p0)  ;;  %v581_v57 = vstv (!%p717_p0), %s1020_s5 }
 0x2be   : > { %578 = sbr.rel (%p717_p0) target bundleno = 712 (0x2c8), region = 52 }
 0x2bf   : > { %v580_v58 = vand.u32 (!%p717_p0), 127, %v579_v56 }
 0x2c1   : > { %v582_v59 = vadd.s32 (!%p717_p0), %v581_v57, %v580_v58 }
 0x2c2   : > { %v583_v60 = vld [vmem:[#allocation2] sm:$0xff] (!%p717_p0) }
 0x2c3   : > { %vm584_vm3 = vcmp.lt.s32.totalorder (!%p717_p0), %v582_v59, 8 }
 0x2c4   : > { %v585_v61 = vsel (!%p717_p0), %vm584_vm3, %v566_v53, 0.0 }
 0x2c5   : > { %v586_v62 = vadd.f32 %v585_v61, %v583_v60 }
 0x2c7   : > { %587 = vst [vmem:[#allocation2] sm:$0xff] %v586_v62 }
 0x2c8 PF: > { %s618_s12 = sshll.u32 %s223_s13, 4  ;;  %s1088_s7 = scalar_lea.hbm %s1143_s4, %s1020_s5  ;;  %s1090_s12 = int_to_ptr.vmem [resolvable:$true] %s618_s12 }
 0x2c9   : > { %s605_s9 = scalar_lea.sflag [#allocation4], %s221_s29  ;;  %s851_s10 = scalar_lea.vmem %s1090_s12, 128 }
 0x2ca   : > { %p852_p1 = scmp.ne.s32.totalorder %s1090_s12, %s851_s10  ;;  %s936_s11 = smov [#allocation3]  }
 0x2cb   : > { %s855_s14 = sshll.u32 %s936_s11, 4  ;;  %s856_s14 = int_to_ptr.vmem [resolvable:$false] %s855_s14 }
 0x2cc   : > { %p853_p2 = pnand %p852_p1, %p1000_p4  ;;  %s857_s5 = scalar_lea.vmem %s856_s14, 256 }
 0x2cd   : > { %p858_p5 = scmp.lt.s32.totalorder %s1090_s12, %s856_s14  ;;  %p859_p6 = scmp.lt.s32.totalorder %s857_s5, %s851_s10 }
 0x2ce   : > { %v591_v63 = vld [vmem:[#allocation2] sm:$0xff]  ;;  %p854_p3 = pneg %p853_p2 }
 0x2cf   : > { %592 = vadd.xlane.f32.xlu0 %v591_v63  ;;  %p860_p7 = por %p859_p6, %p858_p5 }
 0x2d1   : > { %p861_p9 = pnand %p860_p7, %p854_p3 }
 0x35c   : > { %v593_v0 = vpop.xlane.xlu0 %592 }
 0x35d   : > { %v594_v1 = vrot.slane %v593_v0, 4 }
 0x35f   : > { %v595_v2 = vadd.f32 %v594_v1, %v593_v0 }
 0x361   : > { %v596_v3 = vrot.slane %v595_v2, 2 }
 0x363   : > { %v597_v4 = vadd.f32 %v596_v3, %v595_v2 }
 0x365   : > { %v598_v5 = vrot.slane %v597_v4, 1 }
 0x367   : > { %v599_v6 = vadd.f32 %v598_v5, %v597_v4 }
 0x369   : > { %787 = vpush %v599_v6 }
 0x39a   : > { %s788_s8 = spop %787 }
 0x39b   : > { %v601_v7 = vstv %s788_s8 }
 0x39c   : > { %603 = vst [vmem:[%s223_s13] sm:$0xff] %v601_v7 }
 0x39d   : > { %864 = shalt.err (!%p861_p9)
}
 0x39e   : > { %s865_s29 = scalar_lea.hbm %s1088_s7, 128  ;;  %s869_s21 = scalar_lea.hbm %s1143_s4, 256 }
 0x39f   : > { %p866_p10 = scmp.ne.s32.totalorder %s1088_s7, %s865_s29  ;;  %p870_p13 = scmp.lt.u32.totalorder %s1088_s7, %s1143_s4 }
 0x3a0   : > { %p871_p0 = scmp.lt.u32.totalorder %s869_s21, %s865_s29  ;;  %p873_p2 = scmp.lt.u32.totalorder %s865_s29, %s1088_s7 }
 0x3a1   : > { %p867_p11 = pnand %p866_p10, %p1000_p4 }
 0x3a2   : > { %p872_p1 = por %p871_p0, %p870_p13 }
 0x3a3   : > { %p868_p12 = pneg %p867_p11 }
 0x3a4   : > { %p874_p3 = por %p873_p2, %p872_p1 }
 0x3a6   : > { %p875_p5 = pnand %p874_p3, %p868_p12 }
 0x3a8   : > { %878 = shalt.err (!%p875_p5)
}
 0x3a9   : > { %789 = dma.vmem_to_hbm [thread:$0]  (%p1000_p4), %s1090_s12, 128, %s1088_s7, %s605_s9  }
 0x3aa PF: > { %p795_p6 = scmp.ge.s32.totalorder %s929_s20, 2  ;;  %s630_s24 = sand.u32 1, %s909_s15  }
 0x3ab   : > { %s631_s26 = scalar_lea.sflag [#allocation4], %s630_s24 }
 0x3ac   : > { %p792_p7 = pnand %p795_p6, %p1007_p8 }
 0x3ae   : > { %904 = dma.done.wait (!%p792_p7), %s631_s26, 128  }
 0x3af   : > { %906 = vsyncadd (!%p792_p7), %s631_s26, 4294967168  ;;  %s17_s20 = sadd.s32 1, %s929_s20   ;;  %s1146_s15 = smov %s913_s16 }
 0x3b0   : > { %p14_p9 = scmp.ge.s32.totalorder %s17_s20, 4   ;;  %s1147_s16 = smov %s917_s17 }
 0x3b1   : > { %s1148_s17 = smov %s1013_s28  ;;  %s1149_s18 = smov %s925_s19 }
 0x3b2   : > { %s1150_s19 = smov %s1152_s23  ;;  %16 = sbr.rel (!%p14_p9) target bundleno = 4 (0x4), region = 94 }
 0x3b9   :  { %636 = vsyncpa [#allocation4], 1 }
 0x3ba   :  { %638 = vsyncpa [#allocation4 + $0x1], 1 }

</bundles_post_ra>
